<compile_context>
chip_gen: v6e
topology: v6e:2x2x1
jax: 0.10.0
libtpu: 0.0.40
codegen_flags: <defaults>
</compile_context>

<pallas_src>
import functools

import jax
import jax.numpy as jnp
from jax.experimental import pallas as pl
from jax.experimental.pallas import tpu as pltpu


def _round_up(n, m):
    return -(-n // m) * m


def _sigmoid(z):
    # sigmoid(z) = 0.5 * tanh(z/2) + 0.5  -> tanh lives on the EUP; no VPU divide.
    return 0.5 * jnp.tanh(0.5 * z) + 0.5


def _mlp_kernel(x_ref, w1t_ref, b1_ref, w2t_ref, b2_ref, o_ref, *, softmax_head):
    compute_dtype = w1t_ref.dtype

    # fc1: x @ W1^T + b1  (weights pre-transposed/padded; bf16 operands, f32 accumulate)
    x = x_ref[...].astype(compute_dtype)               # no-op if x already bf16
    h = jnp.dot(x, w1t_ref[...], preferred_element_type=jnp.float32)
    h = _sigmoid(h + b1_ref[...])                       # f32 activations

    # fc2: h @ W2^T + b2  (padded class cols have zero weights and -1e30 bias)
    logits = jnp.dot(h.astype(compute_dtype), w2t_ref[...],
                     preferred_element_type=jnp.float32)
    logits = logits + b2_ref[...]

    if softmax_head:
        # nn.Softmax(dim=1): padded lanes have logit ~ -1e30 -> exp() == 0, so the
        # reduction over the full 128-wide block is exact.
        m = jnp.max(logits, axis=-1, keepdims=True)
        e = jnp.exp(logits - m)
        denom = jnp.sum(e, axis=-1, keepdims=True)
        out = e * pl.reciprocal(denom, approx=True)      # EUP recip
    else:
        # nn.Sigmoid() head (num_classes == 1); padded lanes -> 0, sliced away in wrapper.
        out = _sigmoid(logits)

    o_ref[...] = out.astype(o_ref.dtype)


def prepare_params(w1, b1, w2, b2, num_classes, compute_dtype=jnp.bfloat16):
    """One-time prep (outside the hot path): transpose, pad to 128-lane multiples, cast.

    w1: [nodes, input_size], b1: [nodes], w2: [num_classes, nodes], b2: [num_classes].
    """
    w1 = jnp.asarray(w1, jnp.float32)
    b1 = jnp.asarray(b1, jnp.float32)
    w2 = jnp.asarray(w2, jnp.float32)
    b2 = jnp.asarray(b2, jnp.float32)

    nodes, input_size = w1.shape
    c = num_classes
    np_ = _round_up(nodes, 128)          # padded hidden width
    cp = _round_up(max(c, 1), 128)       # padded class width (lane-dense output)

    w1t = jnp.zeros((input_size, np_), compute_dtype).at[:, :nodes].set(
        w1.T.astype(compute_dtype))
    b1r = jnp.zeros((1, np_), jnp.float32).at[:, :nodes].set(b1[None, :])

    # Padded hidden rows of w2t are zero -> the sigmoid(0)=0.5 padded hidden units
    # contribute nothing. Padded class columns get -1e30 bias -> softmax weight 0.
    # (b2 must stay f32: -1e30 does not exist in bf16.)
    w2t = jnp.zeros((np_, cp), compute_dtype).at[:nodes, :c].set(
        w2.T.astype(compute_dtype))
    b2r = jnp.full((1, cp), -1e30, jnp.float32).at[:, :c].set(b2[None, :])

    return {"w1t": w1t, "b1": b1r, "w2t": w2t, "b2": b2r}


def _choose_batch_tile(b, max_tb):
    """Multiple-of-8 batch tile (or the full ragged batch when tiny); megacore-aware."""
    if b <= 8:
        return b                                   # block dim == full array dim: allowed
    tb = max(8, min(max_tb, (b // 8) * 8))
    # v7x megacore: if a large batch would land in a single grid step, split it in two so
    # both TensorCores get work; keep the MXU M dimension reasonably large.
    if pl.cdiv(b, tb) == 1 and b >= 512:
        tb = max(256, _round_up(-(-b // 2), 8))
    return tb


def _vmem_limit_bytes(resident_bytes, x_tile_bytes, out_tile_bytes, h_tile_bytes):
    """Size the scoped VMEM limit from the real footprint, capped per generation."""
    need = (resident_bytes                    # single-buffered weights/biases
            + 2 * x_tile_bytes                # double-buffered x tile
            + 2 * out_tile_bytes              # double-buffered out tile
            + 2 * h_tile_bytes                # f32 hidden activations / temporaries
            + 4 * 1024 * 1024)                # compiler scratch headroom
    try:
        phys = int(pltpu.get_tpu_info().vmem_capacity_bytes)
    except Exception:
        phys = 64 * 1024 * 1024               # conservative fallback (v7x per-core VMEM)
    cap = (phys * 3) // 4
    # Note: if the resident weights alone approach `cap`, a second grid axis over K / np_
    # (with a VMEM accumulator) would be required; not needed for these model sizes.
    return max(16 * 1024 * 1024, min(int(need), cap))


@functools.partial(jax.jit, static_argnames=("num_classes", "block_batch", "out_dtype"))
def mlp_forward(x, params, num_classes, block_batch=1024, out_dtype=jnp.float32):
    """x: [B, input_size] (f32 or bf16); params from prepare_params.

    Returns [B, num_classes] in `out_dtype` (use bf16 to halve output HBM write-back when
    the consumer tolerates it).
    """
    x = jnp.asarray(x)
    if x.dtype not in (jnp.float32, jnp.bfloat16):
        x = x.astype(jnp.float32)
    b, k = x.shape
    w1t, b1r, w2t, b2r = params["w1t"], params["b1"], params["w2t"], params["b2"]
    np_ = w1t.shape[1]
    cp = w2t.shape[1]

    # Batch tiling: no wrapper-side padding; ragged last block is handled by Pallas
    # (OOB input rows are unspecified, OOB output rows are never written; wrapper slices [:b]).
    tb = _choose_batch_tile(b, block_batch)
    num_tiles = pl.cdiv(b, tb)

    kernel = functools.partial(_mlp_kernel, softmax_head=(num_classes > 1))

    w_item = jnp.dtype(w1t.dtype).itemsize
    x_item = jnp.dtype(x.dtype).itemsize
    o_item = jnp.dtype(out_dtype).itemsize
    resident_bytes = (w1t.size * w_item + w2t.size * w_item
                      + b1r.size * 4 + b2r.size * 4)
    vmem_limit = _vmem_limit_bytes(
        resident_bytes,
        x_tile_bytes=tb * k * x_item,
        out_tile_bytes=tb * cp * o_item,
        h_tile_bytes=tb * np_ * 4,
    )

    flops = 2 * b * (k * np_ + np_ * cp)
    transcendentals = b * (np_ + cp)
    bytes_accessed = (b * k * x_item + resident_bytes + b * cp * o_item)

    out_padded = pl.pallas_call(
        kernel,
        out_shape=jax.ShapeDtypeStruct((b, cp), out_dtype),
        grid=(num_tiles,),
        in_specs=[
            # x: tiled over batch (double-buffered by default for DMA/compute overlap).
            pl.BlockSpec((tb, k), lambda i: (i, 0)),
            # Grid-invariant operands: single buffer (constant index_map -> no re-DMA).
            pl.BlockSpec((k, np_), lambda i: (0, 0), pipeline_mode=pl.Buffered(1)),
            pl.BlockSpec((1, np_), lambda i: (0, 0), pipeline_mode=pl.Buffered(1)),
            pl.BlockSpec((np_, cp), lambda i: (0, 0), pipeline_mode=pl.Buffered(1)),
            pl.BlockSpec((1, cp), lambda i: (0, 0), pipeline_mode=pl.Buffered(1)),
        ],
        out_specs=pl.BlockSpec((tb, cp), lambda i: (i, 0)),
        compiler_params=pltpu.CompilerParams(
            dimension_semantics=("parallel",),
            vmem_limit_bytes=vmem_limit,
        ),
        cost_estimate=pl.CostEstimate(
            flops=flops, transcendentals=transcendentals, bytes_accessed=bytes_accessed),
    )(x, w1t, b1r, w2t, b2r)

    # Slice to the logical shape; inside jit this fuses with the consumer.
    return out_padded[:b, :num_classes]


def init_linear_params(key, in_features, out_features):
    """Deterministic init mirroring nn.Linear's default U(-1/sqrt(fan_in), 1/sqrt(fan_in))."""
    kw, kb = jax.random.split(key)
    bound = 1.0 / (in_features ** 0.5)
    w = jax.random.uniform(kw, (out_features, in_features), jnp.float32, -bound, bound)
    b = jax.random.uniform(kb, (out_features,), jnp.float32, -bound, bound)
    return w, b


if __name__ == "__main__":
    # Small shapes consistent with the module: Linear(input_size, nodes), Linear(nodes, num_classes)
    batch, input_size, nodes, num_classes = 8, 32, 64, 8

    key = jax.random.PRNGKey(0)
    kx, k1, k2 = jax.random.split(key, 3)

    x = jax.random.normal(kx, (batch, input_size), jnp.float32)
    w1, b1 = init_linear_params(k1, input_size, nodes)
    w2, b2 = init_linear_params(k2, nodes, num_classes)

    params = prepare_params(w1, b1, w2, b2, num_classes)   # one-time prep (not hot path)
    out = mlp_forward(x, params, num_classes)
    out = jax.block_until_ready(out)

    # Sanity check vs. pure-JAX reference using the same bf16 operand rounding the MXU sees.
    # (pl.reciprocal(approx=True) => rows sum to 1 only to ~1e-3 relative; within tolerance.)
    rb = lambda a: a.astype(jnp.bfloat16).astype(jnp.float32)
    h_ref = jax.nn.sigmoid(rb(x) @ rb(w1).T + b1)
    logits_ref = rb(h_ref) @ rb(w2).T + b2
    ref = jax.nn.softmax(logits_ref, axis=1) if num_classes > 1 else jax.nn.sigmoid(logits_ref)

    assert out.shape == (batch, num_classes)
    max_err = float(jnp.max(jnp.abs(out - ref)))
    assert jnp.allclose(out, ref, atol=2e-3, rtol=2e-3), f"max_err={max_err}"

    # Also exercise a non-multiple-of-8 / multi-tile batch (ragged last block, no jnp.pad)
    # and the sigmoid head (num_classes == 1).
    batch2 = 21
    x2 = jax.random.normal(jax.random.PRNGKey(1), (batch2, input_size), jnp.float32)
    out2 = jax.block_until_ready(mlp_forward(x2, params, num_classes, block_batch=16))
    h2 = jax.nn.sigmoid(rb(x2) @ rb(w1).T + b1)
    ref2 = jax.nn.softmax(rb(h2) @ rb(w2).T + b2, axis=1)
    assert out2.shape == (batch2, num_classes)
    assert jnp.allclose(out2, ref2, atol=2e-3, rtol=2e-3)

    w2s, b2s = init_linear_params(jax.random.PRNGKey(2), nodes, 1)
    params_sig = prepare_params(w1, b1, w2s, b2s, 1)
    out3 = jax.block_until_ready(mlp_forward(x, params_sig, 1))
    ref3 = jax.nn.sigmoid(rb(h_ref) @ rb(w2s).T + b2s)
    assert out3.shape == (batch, 1)
    assert jnp.allclose(out3, ref3, atol=2e-3, rtol=2e-3)

    print("KERNEL_OK")
</pallas_src>

<mosaic_0001>
module attributes {stable_mosaic.version = 11 : i64} {
  func.func @_mlp_kernel(%arg0: i32, %arg1: memref<8x32xf32, #tpu.memory_space<vmem>>, %arg2: memref<32x128xbf16, #tpu.memory_space<vmem>>, %arg3: memref<1x128xf32, #tpu.memory_space<vmem>>, %arg4: memref<128x128xbf16, #tpu.memory_space<vmem>>, %arg5: memref<1x128xf32, #tpu.memory_space<vmem>>, %arg6: memref<8x128xf32, #tpu.memory_space<vmem>>) attributes {dimension_semantics = [#tpu.dimension_semantics<parallel>], iteration_bounds = array<i64: 1>, scalar_prefetch = 0 : i64, scratch_operands = 0 : i64, tpu.core_type = #tpu.core_type<tc>, window_params = [{transform_indices = @transform_0, window_bounds = array<i64: 8, 32>}, {pipeline_mode = #tpu.pipeline_mode<synchronous>, transform_indices = @transform_1, window_bounds = array<i64: 32, 128>}, {pipeline_mode = #tpu.pipeline_mode<synchronous>, transform_indices = @transform_2, window_bounds = array<i64: 1, 128>}, {pipeline_mode = #tpu.pipeline_mode<synchronous>, transform_indices = @transform_3, window_bounds = array<i64: 128, 128>}, {pipeline_mode = #tpu.pipeline_mode<synchronous>, transform_indices = @transform_4, window_bounds = array<i64: 1, 128>}, {transform_indices = @transform_5, window_bounds = array<i64: 8, 128>}]} {
    %c0 = arith.constant 0 : index
    %c0_0 = arith.constant 0 : index
    %0 = vector.load %arg1[%c0, %c0_0] : memref<8x32xf32, #tpu.memory_space<vmem>>, vector<8x32xf32>
    %1 = arith.truncf %0 : vector<8x32xf32> to vector<8x32xbf16>
    %c0_1 = arith.constant 0 : index
    %c0_2 = arith.constant 0 : index
    %2 = vector.load %arg2[%c0_1, %c0_2] : memref<32x128xbf16, #tpu.memory_space<vmem>>, vector<32x128xbf16>
    %cst = arith.constant dense<0.000000e+00> : vector<8x128xf32>
    %3 = tpu.matmul %1, %2, %cst {dimension_numbers = #tpu.dot_dimension_numbers<[1], [0], [0], [1], [0, 0, 1, 1], [], []>} : vector<8x32xbf16>, vector<32x128xbf16>, vector<8x128xf32> -> vector<8x128xf32>
    %c0_3 = arith.constant 0 : index
    %c0_4 = arith.constant 0 : index
    %4 = vector.load %arg3[%c0_3, %c0_4] : memref<1x128xf32, #tpu.memory_space<vmem>>, vector<1x128xf32>
    %5 = vector.broadcast %4 : vector<1x128xf32> to vector<8x128xf32>
    %6 = arith.addf %3, %5 : vector<8x128xf32>
    %cst_5 = arith.constant 5.000000e-01 : f32
    %7 = vector.broadcast %cst_5 : f32 to vector<8x128xf32>
    %8 = arith.mulf %7, %6 : vector<8x128xf32>
    %9 = math.tanh %8 : vector<8x128xf32>
    %cst_6 = arith.constant 5.000000e-01 : f32
    %10 = vector.broadcast %cst_6 : f32 to vector<8x128xf32>
    %11 = arith.mulf %10, %9 : vector<8x128xf32>
    %cst_7 = arith.constant 5.000000e-01 : f32
    %12 = vector.broadcast %cst_7 : f32 to vector<8x128xf32>
    %13 = arith.addf %11, %12 : vector<8x128xf32>
    %14 = arith.truncf %13 : vector<8x128xf32> to vector<8x128xbf16>
    %c0_8 = arith.constant 0 : index
    %c0_9 = arith.constant 0 : index
    %15 = vector.load %arg4[%c0_8, %c0_9] : memref<128x128xbf16, #tpu.memory_space<vmem>>, vector<128x128xbf16>
    %cst_10 = arith.constant dense<0.000000e+00> : vector<8x128xf32>
    %16 = tpu.matmul %14, %15, %cst_10 {dimension_numbers = #tpu.dot_dimension_numbers<[1], [0], [0], [1], [0, 0, 1, 1], [], []>} : vector<8x128xbf16>, vector<128x128xbf16>, vector<8x128xf32> -> vector<8x128xf32>
    %c0_11 = arith.constant 0 : index
    %c0_12 = arith.constant 0 : index
    %17 = vector.load %arg5[%c0_11, %c0_12] : memref<1x128xf32, #tpu.memory_space<vmem>>, vector<1x128xf32>
    %18 = vector.broadcast %17 : vector<1x128xf32> to vector<8x128xf32>
    %19 = arith.addf %16, %18 : vector<8x128xf32>
    %cst_13 = arith.constant dense<0xFF800000> : vector<8xf32>
    %20 = vector.multi_reduction <maximumf>, %19, %cst_13 [1] : vector<8x128xf32> to vector<8xf32>
    %21 = vector.shape_cast %20 : vector<8xf32> to vector<8x1xf32>
    %22 = vector.broadcast %21 : vector<8x1xf32> to vector<8x128xf32>
    %23 = arith.subf %19, %22 : vector<8x128xf32>
    %24 = math.exp %23 : vector<8x128xf32>
    %cst_14 = arith.constant dense<0.000000e+00> : vector<8xf32>
    %25 = vector.multi_reduction <add>, %24, %cst_14 [1] : vector<8x128xf32> to vector<8xf32>
    %26 = vector.shape_cast %25 : vector<8xf32> to vector<8x1xf32>
    %27 = tpu.reciprocal %26 {approx = true} : vector<8x1xf32> -> vector<8x1xf32>
    %28 = vector.broadcast %27 : vector<8x1xf32> to vector<8x128xf32>
    %29 = arith.mulf %24, %28 : vector<8x128xf32>
    %c0_15 = arith.constant 0 : index
    %c0_16 = arith.constant 0 : index
    %30 = vector.load %arg6[%c0_15, %c0_16] : memref<8x128xf32, #tpu.memory_space<vmem>>, vector<8x128xf32>
    tpu.vector_store %arg6[%c0_15, %c0_16], %29 {strides = array<i32>} : memref<8x128xf32, #tpu.memory_space<vmem>>, vector<8x128xf32>,
    return
  }
  func.func @transform_0(%arg0: i32) -> (i32, i32) {
    %c0_i32 = arith.constant 0 : i32
    %c0_i32_0 = arith.constant 0 : i32
    return %arg0, %c0_i32 : i32, i32
  }
  func.func @transform_1(%arg0: i32) -> (i32, i32) {
    %c0_i32 = arith.constant 0 : i32
    %c0_i32_0 = arith.constant 0 : i32
    %c0_i32_1 = arith.constant 0 : i32
    return %c0_i32, %c0_i32_0 : i32, i32
  }
  func.func @transform_2(%arg0: i32) -> (i32, i32) {
    %c0_i32 = arith.constant 0 : i32
    %c0_i32_0 = arith.constant 0 : i32
    %c0_i32_1 = arith.constant 0 : i32
    return %c0_i32, %c0_i32_0 : i32, i32
  }
  func.func @transform_3(%arg0: i32) -> (i32, i32) {
    %c0_i32 = arith.constant 0 : i32
    %c0_i32_0 = arith.constant 0 : i32
    %c0_i32_1 = arith.constant 0 : i32
    return %c0_i32, %c0_i32_0 : i32, i32
  }
  func.func @transform_4(%arg0: i32) -> (i32, i32) {
    %c0_i32 = arith.constant 0 : i32
    %c0_i32_0 = arith.constant 0 : i32
    %c0_i32_1 = arith.constant 0 : i32
    return %c0_i32, %c0_i32_0 : i32, i32
  }
  func.func @transform_5(%arg0: i32) -> (i32, i32) {
    %c0_i32 = arith.constant 0 : i32
    %c0_i32_0 = arith.constant 0 : i32
    return %arg0, %c0_i32 : i32, i32
  }
}

</mosaic_0001>

<bundles_post_ra>
// kernel: mlp_forward.1
= control target key start
LH: loop header
LB: loop body
LE: loop exit
PB: predicated region body
PF: predicated region fallthrough
CT: control target
= control target key end

     0   :  { %10 = vsyncpa [#allocation3], 0  ;;  %s491_s0 = inlined_call_operand.hbm [shape: f32[8,32], index: 0, kind: input, shape index: {}]   ;;  %s492_s1 = inlined_call_operand.hbm [shape: bf16[32,128], index: 1, kind: input, shape index: {}]   ;;  %s493_s2 = inlined_call_operand.vmem [shape: f32[1,128], index: 2, kind: input, shape index: {}]   ;;  %s494_s3 = inlined_call_operand.hbm [shape: bf16[128,128], index: 3, kind: input, shape index: {}]   ;;  %s495_s4 = inlined_call_operand.vmem [shape: f32[1,128], index: 4, kind: input, shape index: {}]   ;;  %s496_s5 = inlined_call_operand.hbm [shape: f32[8,128], index: 5, kind: output, shape index: {}]  }
   0x1   :  { %11 = vsyncpa [#allocation6], 0 }
   0x2   :  { %12 = vsyncpa [#allocation4], 0  ;;  %s435_s18 = smov [#allocation5]  }
   0x3   :  { %s28_s19 = sshll.u32 %s435_s18, 4  ;;  %s29_s19 = int_to_ptr.vmem [resolvable:$true] %s28_s19 }
   0x4   :  { %s357_s20 = scalar_lea.vmem %s29_s19, 256  ;;  %p362_p1 = scmp.lt.s32.totalorder %s29_s19, %s29_s19 }
   0x5   :  { %p358_p0 = scmp.ne.s32.totalorder %s29_s19, %s357_s20  ;;  %p363_p2 = scmp.lt.s32.totalorder %s357_s20, %s357_s20 }
   0x7   :  { %p364_p3 = por %p363_p2, %p362_p1 }
   0x9   :  { %p365_p4 = pnand %p364_p3, %p358_p0 }
   0xb   :  { %368 = shalt.err (!%p365_p4)
}
   0xc   :  { %s436_s21 = smov 64   ;;  %s437_s22 = smov 4  }
   0xd   :  { %34 = dma.hbm_to_vmem [thread:$0]  %s492_s1, 256, %s29_s19, [#allocation6], %s436_s21, %s436_s21, %s437_s22  }
   0xe   :  { %s438_s25 = smov [#allocation2]   ;;  %s439_s27 = smov [#allocation7]  }
   0xf   :  { %s19_s26 = sshll.u32 %s438_s25, 4  ;;  %s42_s28 = sshll.u32 %s439_s27, 4  ;;  %s20_s26 = int_to_ptr.vmem [resolvable:$true] %s19_s26  ;;  %s43_s28 = int_to_ptr.vmem [resolvable:$true] %s42_s28 }
  0x10   :  { %s377_s29 = scalar_lea.vmem %s20_s26, 128  ;;  %p382_p6 = scmp.lt.s32.totalorder %s20_s26, %s20_s26 }
  0x11   :  { %p378_p5 = scmp.ne.s32.totalorder %s20_s26, %s377_s29  ;;  %p383_p7 = scmp.lt.s32.totalorder %s377_s29, %s377_s29 }
  0x13   :  { %p384_p8 = por %p383_p7, %p382_p6 }
  0x15   :  { %p385_p9 = pnand %p384_p8, %p378_p5 }
  0x17   :  { %388 = shalt.err (!%p385_p9)
}
  0x18   :  { %22 = dma.hbm_to_vmem [thread:$0]  %s491_s0, 128, %s20_s26, [#allocation3]  }
  0x19   :  { %s397_s7 = scalar_lea.vmem %s43_s28, 1024  ;;  %p402_p11 = scmp.lt.s32.totalorder %s43_s28, %s43_s28 }
  0x1a   :  { %p398_p10 = scmp.ne.s32.totalorder %s43_s28, %s397_s7  ;;  %p403_p12 = scmp.lt.s32.totalorder %s397_s7, %s397_s7 }
  0x1c   :  { %p404_p13 = por %p403_p12, %p402_p11 }
  0x1e   :  { %p405_p0 = pnand %p404_p13, %p398_p10 }
  0x20   :  { %408 = shalt.err (!%p405_p0)
}
  0x21   :  { %48 = dma.hbm_to_vmem [thread:$0]  %s494_s3, 1024, %s43_s28, [#allocation6], %s436_s21, %s436_s21, %s437_s22  }
  0x22   :  { %429 = dma.done.wait [#allocation3], 128  }
  0x23   :  { %430 = vsyncadd [#allocation3], 4294967168 }
  0x24   :  { %431 = dma.done.wait [#allocation6], 1280  }
  0x25   :  { %432 = vsyncadd [#allocation6], 4294966016  ;;  %v440_v0 = vmov 0.0   ;;  %vm441_vm0 = vmmov 0   ;;  %v333_v1 = vld [vmem:[#allocation5 + $0x8] sm:$0xff]   ;;  %v334_v2 = vld [vmem:[#allocation5] sm:$0xff]  }
  0x26   :  { %297 = vmatprep.subr.bf16.mxu0 %v440_v0  ;;  %301 = vmatprep.mubr.msk.bf16.mxu0 %vm441_vm0, %v440_v0  ;;  %v61_v3 = vld [vmem:[#allocation2] sm:$0xff]  ;;  %v335_v4 = vld [vmem:[#allocation7 + $0x38] sm:$0xff]   ;;  %vm86_vm1 = vcmask 261120   ;;  %v336_v5 = vld [vmem:[#allocation7 + $0x30] sm:$0xff]  }
  0x27   :  { %305 = vmatprep.subr.bf16.mxu1 %v440_v0  ;;  %321 = vmatprep.mubr.msk.bf16.mxu1 %vm441_vm0, %v440_v0  ;;  %v62_v6 = vpack.c.bf16 %v61_v3, %v61_v3  ;;  %v337_v7 = vld [vmem:[#allocation7 + $0x28] sm:$0xff]   ;;  %v338_v8 = vld [vmem:[#allocation7 + $0x20] sm:$0xff]   ;;  %v339_v9 = vld [vmem:[#allocation7 + $0x18] sm:$0xff]  }
  0x28   :  { %298 = vmatpush3.bf16.msra.mxu0 %v333_v1  ;;  %306 = vmatpush3.bf16.msra.mxu1 %v335_v4  ;;  %v340_v10 = vld [vmem:[#allocation7 + $0x10] sm:$0xff]   ;;  %v341_v11 = vld [vmem:[#allocation7 + $0x8] sm:$0xff]   ;;  %v342_v12 = vld [vmem:[#allocation7] sm:$0xff]  }
  0x29   :  { %299 = vmatprep.subr.bf16.mxu0 %v440_v0  ;;  %307 = vmatprep.subr.bf16.mxu1 %v440_v0  ;;  %v272_v13 = vld [vmem:[%s493_s2] ss:$0 sm:$0xff]  ;;  %s442_s2 = smov [#allocation8]  }
  0x2a   :  { %v276_v24 = vld [vmem:[%s495_s4] ss:$0 sm:$0xff]  ;;  %s262_s11 = sshll.u32 %s442_s2, 4  ;;  %s263_s11 = int_to_ptr.vmem [resolvable:$true] %s262_s11 }
  0x2b   :  { %s409_s4 = scalar_lea.vmem %s263_s11, 128  ;;  %p414_p2 = scmp.lt.s32.totalorder %s263_s11, %s263_s11 }
  0x2c   :  { %300 = vmatpush3.bf16.msra.mxu0 %v334_v2  ;;  %308 = vmatpush3.bf16.msra.mxu1 %v336_v5  ;;  %p410_p1 = scmp.ne.s32.totalorder %s263_s11, %s409_s4  ;;  %p415_p3 = scmp.lt.s32.totalorder %s409_s4, %s409_s4 }
  0x2d   :  { %309 = vmatprep.subr.bf16.mxu1 %v440_v0 }
  0x2e   :  { %p416_p4 = por %p415_p3, %p414_p2 }
  0x2f   :  { %302 = vmatmul.mubr.msk.bf16.vlgmr.msra.gmra.mxu0 %vm86_vm1, %v62_v6 }
  0x30   :  { %310 = vmatpush3.bf16.msra.mxu1 %v337_v7  ;;  %p417_p5 = pnand %p416_p4, %p410_p1 }
  0x31   :  { %311 = vmatprep.subr.bf16.mxu1 %v440_v0 }
  0x34   :  { %312 = vmatpush3.bf16.msra.mxu1 %v338_v8 }
  0x35   :  { %313 = vmatprep.subr.bf16.mxu1 %v440_v0 }
  0x38   :  { %314 = vmatpush3.bf16.msra.mxu1 %v339_v9 }
  0x39   :  { %315 = vmatprep.subr.bf16.mxu1 %v440_v0 }
  0x3c   :  { %316 = vmatpush3.bf16.msra.mxu1 %v340_v10 }
  0x3d   :  { %317 = vmatprep.subr.bf16.mxu1 %v440_v0 }
  0x40   :  { %318 = vmatpush3.bf16.msra.mxu1 %v341_v11 }
  0x41   :  { %319 = vmatprep.subr.bf16.mxu1 %v440_v0 }
  0x44   :  { %320 = vmatpush3.bf16.msra.mxu1 %v342_v12 }
  0xef   :  { %v124_v14 = vpop.f32.mrf.mxu0 }
  0xf0   :  { %v125_v15 = vadd.f32 %v272_v13, %v124_v14 }
  0xf1   :  { %v303_v16 = vpop.f32.mrf.mxu0 }
  0xf2   :  { %v130_v17 = vmul.f32 0.5, %v125_v15 }
  0xf3   :  { %v127_v18 = vpop.f32.mrf.mxu0 }
  0xf4   :  { %343 = vtanh.f32 %v130_v17 }
  0xf5   :  { %v304_v19 = vpop.f32.mrf.mxu0 }
 0x101   :  { %v344_v20 = vpop.eup %343 }
 0x102   :  { %v132_v21 = vmul.f32 0.5, %v344_v20 }
 0x104   :  { %v133_v22 = vadd.f32 0.5, %v132_v21 }
 0x106   :  { %v134_v23 = vpack.c.bf16 %v133_v22, %v133_v22 }
 0x108   :  { %322 = vmatmul.mubr.bf16.vlgmr.msra.gmra.mxu1 %v134_v23 }
 0x1c8   :  { %v240_v25 = vpop.f32.mrf.mxu1 }
 0x1c9   :  { %v241_v26 = vadd.f32 %v276_v24, %v240_v25 }
 0x1ca   :  { %v323_v27 = vpop.f32.mrf.mxu1 }
 0x1cb   :  { %246 = vmax.xlane.f32.xlu0 %v241_v26 }
 0x1cc   :  { %v243_v28 = vpop.f32.mrf.mxu1 }
 0x1ce   :  { %v324_v29 = vpop.f32.mrf.mxu1 }
 0x254   :  { %v247_v30 = vpop.xlane.xlu0 %246 }
 0x255   :  { %v248_v31 = vsub.f32 %v241_v26, %v247_v30 }
 0x257   :  { %v249_v32 = vmul.f32 1.442695, %v248_v31 }
 0x259   :  { %345 = vpow2.f32 %v249_v32 }
 0x266   :  { %v346_v33 = vpop.eup %345 }
 0x267   :  { %251 = vadd.xlane.f32.xlu0 %v346_v33 }
 0x2f0   :  { %v252_v34 = vpop.xlane.xlu0 %251 }
 0x2f1   :  { %347 = vrcp.f32 %v252_v34 }
 0x2fe   :  { %v348_v35 = vpop.eup %347 }
 0x2ff   :  { %v254_v36 = vmul.f32 %v348_v35, %v346_v33 }
 0x301   :  { %255 = vst [vmem:[#allocation8] sm:$0xff] %v254_v36 }
 0x302   :  { %420 = shalt.err (!%p417_p5)
}
 0x303   :  { %265 = dma.vmem_to_hbm [thread:$0]  %s263_s11, 128, %s496_s5, [#allocation4]  }
 0x304   :  { %433 = dma.done.wait [#allocation4], 128  }
 0x305   :  { %434 = vsyncadd [#allocation4], 4294967168 }
 0x306   :  { %269 = vsyncpa [#allocation3], 1 }
 0x307   :  { %270 = vsyncpa [#allocation6], 1 }
 0x308   :  { %271 = vsyncpa [#allocation4], 1 }

</bundles_post_ra>
